<compile_context>
chip_gen: v7x
topology: tpu7x:2x2x1
jax: 0.10.0
libtpu: 0.0.40
codegen_flags: <defaults>
</compile_context>

<pallas_src>
import functools
import math

import numpy as np
import jax
import jax.numpy as jnp
from jax import lax
from jax.experimental import pallas as pl
from jax.experimental.pallas import tpu as pltpu

EPS = 1e-5


# ----------------------------------------------------------------------------
# Kernel: one matmul + branch max + ReLU over a lane-dense slab.
# ----------------------------------------------------------------------------
def _fused_kernel(w_ref, rhs_ref, o_ref, *, c_out, n_branch):
    # w_ref:   (n_branch*c_out, D_pad)  block-diagonal, per-branch BN-scaled
    #          weights; column D0-1 holds the folded conv-bias + BN shift.
    # rhs_ref: (D_pad, B_tile*L)        wrapper-built im2col / pooled / ones slab.
    # o_ref:   (c_out, B_tile*L)        lane-dense output block.
    pre = jnp.dot(w_ref[...], rhs_ref[...],
                  preferred_element_type=jnp.float32)       # (nb*C_out, B*L)
    acc = pre[0:c_out, :]
    for i in range(1, n_branch):                            # sublane-aligned slices
        acc = jnp.maximum(acc, pre[i * c_out:(i + 1) * c_out, :])
    # max(relu(a), relu(b)) == relu(max(a, b)): one ReLU after the branch max.
    o_ref[...] = jnp.maximum(acc, 0.0).astype(o_ref.dtype)


def _choose_batch_tile(n, length, target_lanes=512):
    """Smallest multiple of the lane-density base (B*L % 128 == 0) that reaches
    ~target_lanes lanes per grid step without grossly over-padding tiny N."""
    base = 128 // math.gcd(length, 128)
    want = max(1, -(-target_lanes // (base * length)))
    have = max(1, -(-n // base))
    return base * min(want, have)


# ----------------------------------------------------------------------------
# Wrapper: build lane-dense operands in XLA, call one pallas_call.
# ----------------------------------------------------------------------------
def dilated_conv_block_forward(x, params, dilations):
    N, C_in, L = x.shape
    w = params["w"]                              # (C_out, C_in, K)
    C_out, _, K = w.shape
    nd = len(dilations)
    nb = nd + 1                                  # + residual branch

    # --- batch tiling: fold B_tile samples into the lane dimension ----------
    B_tile = _choose_batch_tile(N, L)
    N_pad = -(-N // B_tile) * B_tile
    xb = jnp.pad(x, ((0, N_pad - N), (0, 0), (0, 0)))

    # --- im2col (all dilated taps) + residual maxpool + ones row, in XLA ----
    cols = []
    for d in dilations:
        pad_total = d * (K - 1)                  # conv1d_same_padding, stride=1
        left = pad_total // 2
        xp = jnp.pad(xb, ((0, 0), (0, 0), (left, pad_total - left)))
        for t in range(K):
            cols.append(xp[:, :, t * d: t * d + L])          # (N_pad, C_in, L)
    # residual: MaxPool1d(k=3, s=1, same) -> -inf padding handled here, not in-kernel
    xm = jnp.pad(xb, ((0, 0), (0, 0), (1, 1)), constant_values=-jnp.inf)
    pooled = jnp.maximum(jnp.maximum(xm[:, :, 0:L], xm[:, :, 1:L + 1]),
                         xm[:, :, 2:L + 2])                   # (N_pad, C_in, L)
    cols.append(pooled)
    cols.append(jnp.ones((N_pad, 1, L), x.dtype))             # ones row -> shifts

    D0 = nd * K * C_in + C_in + 1
    D_pad = -(-D0 // 8) * 8
    rhs = jnp.concatenate(cols, axis=1)                        # (N_pad, D0, L)
    rhs = jnp.transpose(rhs, (1, 0, 2)).reshape(D0, N_pad * L)
    rhs = jnp.pad(rhs, ((0, D_pad - D0), (0, 0)))              # (D_pad, N_pad*L)

    # --- fold conv bias + eval-mode BN into one block-diagonal weight -------
    w2 = jnp.transpose(w, (0, 2, 1)).reshape(C_out, K * C_in)  # rows = (tap, c_in)
    b = params["b"].reshape(C_out)
    W_all = jnp.zeros((nb * C_out, D_pad), jnp.float32)
    for i in range(nd):
        sc = params["bn_gamma"][i] / jnp.sqrt(params["bn_var"][i] + EPS)
        sh = params["bn_beta"][i] - params["bn_mean"][i] * sc
        W_all = W_all.at[i * C_out:(i + 1) * C_out,
                         i * K * C_in:(i + 1) * K * C_in].set(sc[:, None] * w2)
        W_all = W_all.at[i * C_out:(i + 1) * C_out, D0 - 1].set(sh + sc * b)
    rsc = params["res_gamma"] / jnp.sqrt(params["res_var"] + EPS)
    rsh = params["res_beta"] - params["res_mean"] * rsc
    W_all = W_all.at[nd * C_out:, nd * K * C_in:nd * K * C_in + C_in].set(
        rsc[:, None] * params["w_res"])
    W_all = W_all.at[nd * C_out:, D0 - 1].set(rsh)

    # --- one fused pallas_call ----------------------------------------------
    lanes = B_tile * L                                         # multiple of 128
    kernel = functools.partial(_fused_kernel, c_out=C_out, n_branch=nb)
    out = pl.pallas_call(
        kernel,
        out_shape=jax.ShapeDtypeStruct((C_out, N_pad * L), jnp.float32),
        grid=(N_pad // B_tile,),
        in_specs=[
            pl.BlockSpec((nb * C_out, D_pad), lambda n: (0, 0)),   # resident weights
            pl.BlockSpec((D_pad, lanes), lambda n: (0, n)),        # lane-dense RHS
        ],
        out_specs=pl.BlockSpec((C_out, lanes), lambda n: (0, n)),  # lane-dense store
        compiler_params=pltpu.CompilerParams(
            dimension_semantics=("parallel",)),
    )(W_all, rhs)

    # (C_out, N_pad*L) -> (N, C_out, L)
    return jnp.transpose(out.reshape(C_out, N_pad, L), (1, 0, 2))[:N]


# ----------------------------------------------------------------------------
# Pure-JAX reference (matches the PyTorch module in eval mode).
# ----------------------------------------------------------------------------
def _fold_bn(gamma, beta, mean, var):
    scale = gamma / jnp.sqrt(var + EPS)
    shift = beta - mean * scale
    return scale.reshape(-1, 1), shift.reshape(-1, 1)


def reference_forward(x, params, dilations):
    N, C_in, L = x.shape
    w, b = params["w"], params["b"]
    K = w.shape[2]
    outs = []
    for i, d in enumerate(dilations):
        pad_total = d * (K - 1)
        left = pad_total // 2
        right = pad_total - left
        y = lax.conv_general_dilated(x, w, (1,), [(left, right)],
                                     rhs_dilation=(d,),
                                     dimension_numbers=("NCH", "OIH", "NCH"))
        y = y + b[None]
        sc, sh = _fold_bn(params["bn_gamma"][i], params["bn_beta"][i],
                          params["bn_mean"][i], params["bn_var"][i])
        outs.append(jnp.maximum(y * sc[None] + sh[None], 0.0))
    xp = jnp.pad(x, ((0, 0), (0, 0), (1, 1)), constant_values=-jnp.inf)
    pooled = jnp.maximum(jnp.maximum(xp[:, :, 0:L], xp[:, :, 1:L + 1]),
                         xp[:, :, 2:L + 2])
    y = jnp.einsum("oc,ncl->nol", params["w_res"], pooled)
    sc, sh = _fold_bn(params["res_gamma"], params["res_beta"],
                      params["res_mean"], params["res_var"])
    outs.append(jnp.maximum(y * sc[None] + sh[None], 0.0))
    return jnp.max(jnp.stack(outs, axis=0), axis=0)


if __name__ == "__main__":
    N, C_in, C_out, K, L = 2, 4, 8, 3, 16
    dilations = [1, 2, 4]
    nd = len(dilations)

    key = jax.random.PRNGKey(0)
    ks = jax.random.split(key, 12)
    x = jax.random.normal(ks[0], (N, C_in, L), jnp.float32)

    params = {
        "w":        0.3 * jax.random.normal(ks[1], (C_out, C_in, K), jnp.float32),
        "b":        0.1 * jax.random.normal(ks[2], (C_out, 1), jnp.float32),
        "w_res":    0.3 * jax.random.normal(ks[3], (C_out, C_in), jnp.float32),
        "bn_gamma": 1.0 + 0.1 * jax.random.normal(ks[4], (nd, C_out), jnp.float32),
        "bn_beta":  0.1 * jax.random.normal(ks[5], (nd, C_out), jnp.float32),
        "bn_mean":  0.1 * jax.random.normal(ks[6], (nd, C_out), jnp.float32),
        "bn_var":   1.0 + 0.5 * jax.random.uniform(ks[7], (nd, C_out), jnp.float32),
        "res_gamma": 1.0 + 0.1 * jax.random.normal(ks[8], (C_out,), jnp.float32),
        "res_beta":  0.1 * jax.random.normal(ks[9], (C_out,), jnp.float32),
        "res_mean":  0.1 * jax.random.normal(ks[10], (C_out,), jnp.float32),
        "res_var":   1.0 + 0.5 * jax.random.uniform(ks[11], (C_out,), jnp.float32),
    }

    out = dilated_conv_block_forward(x, params, dilations)
    out = jax.block_until_ready(out)

    ref = reference_forward(x, params, dilations)
    np.testing.assert_allclose(np.asarray(out), np.asarray(ref),
                               rtol=1e-5, atol=1e-5)
    print("KERNEL_OK")
</pallas_src>

<mosaic_0001>
module attributes {stable_mosaic.version = 11 : i64} {
  func.func @_fused_kernel(%arg0: i32, %arg1: memref<32x48xf32, #tpu.memory_space<vmem>>, %arg2: memref<48x128xf32, #tpu.memory_space<vmem>>, %arg3: memref<8x128xf32, #tpu.memory_space<vmem>>) attributes {dimension_semantics = [#tpu.dimension_semantics<parallel>], iteration_bounds = array<i64: 1>, scalar_prefetch = 0 : i64, scratch_operands = 0 : i64, tpu.core_type = #tpu.core_type<tc>, window_params = [{pipeline_mode = #tpu.pipeline_mode<synchronous>, transform_indices = @transform_0, window_bounds = array<i64: 32, 48>}, {transform_indices = @transform_1, window_bounds = array<i64: 48, 128>}, {transform_indices = @transform_2, window_bounds = array<i64: 8, 128>}]} {
    %c0 = arith.constant 0 : index
    %c0_0 = arith.constant 0 : index
    %0 = vector.load %arg1[%c0, %c0_0] : memref<32x48xf32, #tpu.memory_space<vmem>>, vector<32x48xf32>
    %c0_1 = arith.constant 0 : index
    %c0_2 = arith.constant 0 : index
    %1 = vector.load %arg2[%c0_1, %c0_2] : memref<48x128xf32, #tpu.memory_space<vmem>>, vector<48x128xf32>
    %cst = arith.constant dense<0.000000e+00> : vector<32x128xf32>
    %2 = tpu.matmul %0, %1, %cst {dimension_numbers = #tpu.dot_dimension_numbers<[1], [0], [0], [1], [0, 0, 1, 1], [], []>} : vector<32x48xf32>, vector<48x128xf32>, vector<32x128xf32> -> vector<32x128xf32>
    %3 = vector.extract_strided_slice %2 {offsets = [0, 0], sizes = [8, 128], strides = [1, 1]} : vector<32x128xf32> to vector<8x128xf32>
    %4 = vector.extract_strided_slice %2 {offsets = [8, 0], sizes = [8, 128], strides = [1, 1]} : vector<32x128xf32> to vector<8x128xf32>
    %5 = arith.maximumf %3, %4 : vector<8x128xf32>
    %6 = vector.extract_strided_slice %2 {offsets = [16, 0], sizes = [8, 128], strides = [1, 1]} : vector<32x128xf32> to vector<8x128xf32>
    %7 = arith.maximumf %5, %6 : vector<8x128xf32>
    %8 = vector.extract_strided_slice %2 {offsets = [24, 0], sizes = [8, 128], strides = [1, 1]} : vector<32x128xf32> to vector<8x128xf32>
    %9 = arith.maximumf %7, %8 : vector<8x128xf32>
    %cst_3 = arith.constant 0.000000e+00 : f32
    %10 = vector.broadcast %cst_3 : f32 to vector<8x128xf32>
    %11 = arith.maximumf %9, %10 : vector<8x128xf32>
    %c0_4 = arith.constant 0 : index
    %c0_5 = arith.constant 0 : index
    %12 = vector.load %arg3[%c0_4, %c0_5] : memref<8x128xf32, #tpu.memory_space<vmem>>, vector<8x128xf32>
    tpu.vector_store %arg3[%c0_4, %c0_5], %11 {strides = array<i32>} : memref<8x128xf32, #tpu.memory_space<vmem>>, vector<8x128xf32>,
    return
  }
  func.func @transform_0(%arg0: i32) -> (i32, i32) {
    %c0_i32 = arith.constant 0 : i32
    %c0_i32_0 = arith.constant 0 : i32
    %c0_i32_1 = arith.constant 0 : i32
    return %c0_i32, %c0_i32_0 : i32, i32
  }
  func.func @transform_1(%arg0: i32) -> (i32, i32) {
    %c0_i32 = arith.constant 0 : i32
    %c0_i32_0 = arith.constant 0 : i32
    return %c0_i32, %arg0 : i32, i32
  }
  func.func @transform_2(%arg0: i32) -> (i32, i32) {
    %c0_i32 = arith.constant 0 : i32
    %c0_i32_0 = arith.constant 0 : i32
    return %c0_i32, %arg0 : i32, i32
  }
}

</mosaic_0001>

<bundles_post_ra>
// kernel: tpu_custom_call.1
= control target key start
LH: loop header
LB: loop body
LE: loop exit
PB: predicated region body
PF: predicated region fallthrough
CT: control target
= control target key end

     0   :  { %7 = vsyncpa [#allocation3], 0  ;;  %s356_s0 = inlined_call_operand.hbm [shape: f32[32,48], index: 0, kind: input, shape index: {}]   ;;  %s357_s1 = inlined_call_operand.hbm [shape: f32[48,128], index: 1, kind: input, shape index: {}]   ;;  %s358_s2 = inlined_call_operand.hbm [shape: f32[8,128], index: 2, kind: output, shape index: {}]  }
   0x1   :  { %8 = vsyncpa [#allocation6], 0 }
   0x2   :  { %9 = vsyncpa [#allocation4], 0  ;;  %s296_s9 = smov [#allocation2]   ;;  %s224_s13 = scalar_lea.hbm %s356_s0, 512 }
   0x3   :  { %s15_s10 = sshll.u32 %s296_s9, 4  ;;  %p225_p0 = scmp.ne.s32.totalorder %s356_s0, %s224_s13  ;;  %s16_s10 = int_to_ptr.vmem [resolvable:$true] %s15_s10 }
   0x4   :  { %p228_p1 = scmp.lt.u32.totalorder %s224_s13, %s356_s0 }
   0x6   :  { %p230_p2 = pnand %p228_p1, %p225_p0 }
   0x8   :  { %233 = shalt.err (!%p230_p2)
}
   0x9   :  { %s234_s18 = scalar_lea.vmem %s16_s10, 512  ;;  %p239_p4 = scmp.lt.s32.totalorder %s16_s10, %s16_s10 }
   0xa   :  { %p235_p3 = scmp.ne.s32.totalorder %s16_s10, %s234_s18  ;;  %p240_p5 = scmp.lt.s32.totalorder %s234_s18, %s234_s18 }
   0xc   :  { %p241_p6 = por %p240_p5, %p239_p4 }
   0xe   :  { %p242_p7 = pnand %p241_p6, %p235_p3 }
  0x10   :  { %245 = shalt.err (!%p242_p7)
}
  0x11   :  { %s297_s19 = smov 128   ;;  %s298_s20 = smov 8  }
  0x12   :  { %21 = dma.hbm_to_vmem [thread:$0]  %s356_s0, 512, %s16_s10, [#allocation3], %s297_s19, %s297_s19, %s298_s20  }
  0x13   :  { %s299_s23 = smov [#allocation5]   ;;  %s246_s27 = scalar_lea.hbm %s357_s1, 768 }
  0x14   :  { %s27_s24 = sshll.u32 %s299_s23, 4  ;;  %p247_p8 = scmp.ne.s32.totalorder %s357_s1, %s246_s27  ;;  %s28_s24 = int_to_ptr.vmem [resolvable:$true] %s27_s24 }
  0x15   :  { %p250_p9 = scmp.lt.u32.totalorder %s246_s27, %s357_s1 }
  0x17   :  { %p252_p10 = pnand %p250_p9, %p247_p8 }
  0x19   :  { %255 = shalt.err (!%p252_p10)
}
  0x1a   :  { %s256_s4 = scalar_lea.vmem %s28_s24, 768  ;;  %p261_p12 = scmp.lt.s32.totalorder %s28_s24, %s28_s24 }
  0x1b   :  { %p257_p11 = scmp.ne.s32.totalorder %s28_s24, %s256_s4  ;;  %p262_p13 = scmp.lt.s32.totalorder %s256_s4, %s256_s4 }
  0x1d   :  { %p263_p0 = por %p262_p13, %p261_p12 }
  0x1f   :  { %p264_p1 = pnand %p263_p0, %p257_p11 }
  0x21   :  { %267 = shalt.err (!%p264_p1)
}
  0x22   :  { %33 = dma.hbm_to_vmem [thread:$0]  %s357_s1, 768, %s28_s24, [#allocation6], %s297_s19, %s297_s19, %s298_s20  }
  0x23   :  { %290 = dma.done.wait [#allocation3], 512  }
  0x24   :  { %291 = vsyncadd [#allocation3], 4294966784 }
  0x25   :  { %292 = dma.done.wait [#allocation6], 768  }
  0x26   :  { %293 = vsyncadd [#allocation6], 4294966528  ;;  %v44_v0 = vld [vmem:[#allocation5] sm:$0xff]  ;;  %v45_v1 = vld [vmem:[#allocation5 + $0x8] sm:$0xff]  ;;  %vm50_vm0 = vcmask 392192   ;;  %s300_s1 = smov [#allocation7]  }
  0x27   :  { %v46_v2 = vld [vmem:[#allocation5 + $0x10] sm:$0xff]  ;;  %v201_v3 = vpack.c.bf16 %v45_v1, %v44_v0  ;;  %v47_v4 = vld [vmem:[#allocation5 + $0x18] sm:$0xff]  ;;  %v48_v6 = vld [vmem:[#allocation5 + $0x20] sm:$0xff]  ;;  %s159_s6 = sshll.u32 %s300_s1, 4  ;;  %s160_s6 = int_to_ptr.vmem [resolvable:$true] %s159_s6 }
  0x28   :  { %v205_v5 = vpack.c.bf16 %v47_v4, %v46_v2  ;;  %v49_v7 = vld [vmem:[#allocation5 + $0x28] sm:$0xff]  ;;  %v40_v8 = vld [vmem:[#allocation2] sm:$0xff]  ;;  %v42_v9 = vld [vmem:[#allocation2 + $0x10] sm:$0xff]  ;;  %s268_s7 = scalar_lea.vmem %s160_s6, 128  ;;  %p273_p3 = scmp.lt.s32.totalorder %s160_s6, %s160_s6 }
  0x29   :  { %202 = vmatprep.subr.bf16.mxu0 %v201_v3  ;;  %213 = vmatprep.subr.bf16.mxu1 %v201_v3  ;;  %v209_v10 = vpack.c.bf16 %v49_v7, %v48_v6  ;;  %v41_v11 = vld [vmem:[#allocation2 + $0x8] sm:$0xff]  ;;  %v43_v12 = vld [vmem:[#allocation2 + $0x18] sm:$0xff]  ;;  %p269_p2 = scmp.ne.s32.totalorder %s160_s6, %s268_s7  ;;  %p274_p4 = scmp.lt.s32.totalorder %s268_s7, %s268_s7 }
  0x2a   :  { %204 = vmatpush3.bf16.msra.mxu0 %v201_v3  ;;  %216 = vmatpush3.bf16.msra.mxu1 %v201_v3 }
  0x2b   :  { %206 = vmatprep.subr.bf16.mxu0 %v205_v5  ;;  %214 = vmatprep.subr.bf16.mxu1 %v205_v5  ;;  %p275_p5 = por %p274_p4, %p273_p3 }
  0x2c   :  { %195 = vmatprep.mubr.msk.f32.mxu0 %vm50_vm0, %v40_v8  ;;  %198 = vmatprep.mubr.msk.f32.mxu1 %vm50_vm0, %v42_v9 }
  0x2d   :  { %p276_p6 = pnand %p275_p5, %p269_p2 }
  0x2e   :  { %208 = vmatpush3.bf16.msra.mxu0 %v205_v5  ;;  %217 = vmatpush3.bf16.msra.mxu1 %v205_v5 }
  0x2f   :  { %210 = vmatprep.subr.bf16.mxu0 %v209_v10  ;;  %215 = vmatprep.subr.bf16.mxu1 %v209_v10 }
  0x32   :  { %212 = vmatpush3.bf16.msra.mxu0 %v209_v10  ;;  %218 = vmatpush3.bf16.msra.mxu1 %v209_v10 }
  0x35   :  { %196 = vmatmul.mubr.msk.f32.vlgmr.msra.gmra.mrb[0].mxu0 %vm50_vm0, %v41_v11  ;;  %199 = vmatmul.mubr.msk.f32.vlgmr.msra.gmra.mrb[0].mxu1 %vm50_vm0, %v43_v12 }
 0x108   :  { %v197_v13 = vpop.f32.mrb[0].mxu0  ;;  %v200_v14 = vpop.f32.mrb[0].mxu1 }
 0x109   :  { %v129_v15 = vpop.f32.mrb[1].mxu0  ;;  %v139_v16 = vpop.f32.mrb[1].mxu1 }
 0x10a   :  { %v148_v17 = vmax.f32 %v129_v15, %v197_v13 }
 0x10c   :  { %v149_v18 = vmax.f32 %v148_v17, %v139_v16 }
 0x10e   :  { %v150_v19 = vmax.f32 %v149_v18, %v200_v14 }
 0x110   :  { %v151_v20 = vmax.f32 %v150_v19, 0.0 }
 0x112   :  { %152 = vst [vmem:[#allocation7] sm:$0xff] %v151_v20 }
 0x113   :  { %279 = shalt.err (!%p276_p6)
}
 0x114   :  { %s280_s10 = scalar_lea.hbm %s358_s2, 128 }
 0x115   :  { %p281_p7 = scmp.ne.s32.totalorder %s358_s2, %s280_s10  ;;  %p284_p8 = scmp.lt.u32.totalorder %s280_s10, %s358_s2 }
 0x117   :  { %p286_p9 = pnand %p284_p8, %p281_p7 }
 0x119   :  { %289 = shalt.err (!%p286_p9)
}
 0x11a   :  { %162 = dma.vmem_to_hbm [thread:$0]  %s160_s6, 128, %s358_s2, [#allocation4]  }
 0x11b   :  { %294 = dma.done.wait [#allocation4], 128  }
 0x11c   :  { %295 = vsyncadd [#allocation4], 4294967168 }
 0x11d   :  { %166 = vsyncpa [#allocation3], 1 }
 0x11e   :  { %167 = vsyncpa [#allocation6], 1 }
 0x11f   :  { %168 = vsyncpa [#allocation4], 1 }

</bundles_post_ra>
